<compile_context>
chip_gen: v6e
topology: v6e:2x2x1
jax: 0.10.0
libtpu: 0.0.40
codegen_flags: <defaults>
</compile_context>

<pallas_src>
import functools

import jax
import jax.numpy as jnp
from jax.experimental import pallas as pl
from jax.experimental.pallas import tpu as pltpu


def _mlp_kernel(x_ref, bits_ref, w1_ref, b1_ref, w2_ref, b2_ref, o_ref,
                *, keep_threshold):
    # fc1 (+ folded 1/(1-p) scale) + ReLU  -- MXU matmul, f32 accumulate.
    h = jnp.dot(x_ref[...], w1_ref[...], preferred_element_type=jnp.float32)
    h = jnp.maximum(h + b1_ref[...], 0.0)          # (TB, 50) + (1, 50)

    # Dropout: keep iff bits >= p*2^32  (P(keep) = 1-p). Scale already folded
    # into w1/b1, so this is a single compare + select on the VPU.
    keep = bits_ref[...] >= jnp.uint32(keep_threshold)
    h = jnp.where(keep, h, 0.0)

    # fc2
    out = jnp.dot(h, w2_ref[...], preferred_element_type=jnp.float32)
    out = out + b2_ref[...]                        # (TB, 10) + (1, 10)
    o_ref[...] = out.astype(o_ref.dtype)


def mlp_forward(x, w1, b1, w2, b2, dropout_key, *, p_drop=0.5, block_rows=512):
    B, K = x.shape
    H = w1.shape[1]
    N = w2.shape[1]

    # Fold the dropout keep-scale 1/(1-p) into fc1 (ReLU commutes with positive scale).
    scale = 1.0 / (1.0 - p_drop)
    w1s = (w1 * scale).astype(jnp.float32)
    b1s = (b1 * scale).astype(jnp.float32)

    # Host-side random bits for the dropout mask (portable across TPU / interpret).
    bits = jax.random.bits(dropout_key, (B, H), dtype=jnp.uint32)
    keep_threshold = min(int(round(p_drop * (2 ** 32))), 2 ** 32 - 1)

    # Batch tiling: TB rows per grid step (multiple of 8, or the full batch).
    TB = B if B <= block_rows else block_rows
    grid = (pl.cdiv(B, TB),)

    kernel = functools.partial(_mlp_kernel, keep_threshold=keep_threshold)
    return pl.pallas_call(
        kernel,
        out_shape=jax.ShapeDtypeStruct((B, N), x.dtype),
        grid=grid,
        in_specs=[
            pl.BlockSpec((TB, K), lambda i: (i, 0)),   # x tile streams per step
            pl.BlockSpec((TB, H), lambda i: (i, 0)),   # dropout bits tile
            pl.BlockSpec((K, H), lambda i: (0, 0)),    # w1 VMEM-resident
            pl.BlockSpec((1, H), lambda i: (0, 0)),    # b1
            pl.BlockSpec((H, N), lambda i: (0, 0)),    # w2
            pl.BlockSpec((1, N), lambda i: (0, 0)),    # b2
        ],
        out_specs=pl.BlockSpec((TB, N), lambda i: (i, 0)),
        compiler_params=pltpu.CompilerParams(
            dimension_semantics=("parallel",)),
    )(x, bits, w1s, b1s, w2, b2)


def init_params(key):
    # PyTorch nn.Linear default init: U(-1/sqrt(fan_in), +1/sqrt(fan_in))
    k1, k2, k3, k4 = jax.random.split(key, 4)
    lim1 = 1.0 / jnp.sqrt(100.0)
    lim2 = 1.0 / jnp.sqrt(50.0)
    w1 = jax.random.uniform(k1, (100, 50), jnp.float32, -lim1, lim1)
    b1 = jax.random.uniform(k2, (1, 50), jnp.float32, -lim1, lim1)
    w2 = jax.random.uniform(k3, (50, 10), jnp.float32, -lim2, lim2)
    b2 = jax.random.uniform(k4, (1, 10), jnp.float32, -lim2, lim2)
    return w1, b1, w2, b2


if __name__ == "__main__":
    key = jax.random.PRNGKey(0)
    kx, kp, kd = jax.random.split(key, 3)
    B = 8
    x = jax.random.normal(kx, (B, 100), jnp.float32)
    w1, b1, w2, b2 = init_params(kp)

    out = mlp_forward(x, w1, b1, w2, b2, kd, p_drop=0.5)
    out = jax.block_until_ready(out)
    assert out.shape == (B, 10) and out.dtype == jnp.float32
    assert bool(jnp.all(jnp.isfinite(out)))
    print("KERNEL_OK")
</pallas_src>

<mosaic_0001>
module attributes {stable_mosaic.version = 11 : i64} {
  func.func @_mlp_kernel(%arg0: i32, %arg1: memref<8x100xf32, #tpu.memory_space<vmem>>, %arg2: memref<8x50xi32, #tpu.memory_space<vmem>>, %arg3: memref<100x50xf32, #tpu.memory_space<vmem>>, %arg4: memref<1x50xf32, #tpu.memory_space<vmem>>, %arg5: memref<50x10xf32, #tpu.memory_space<vmem>>, %arg6: memref<1x10xf32, #tpu.memory_space<vmem>>, %arg7: memref<8x10xf32, #tpu.memory_space<vmem>>) attributes {dimension_semantics = [#tpu.dimension_semantics<parallel>], iteration_bounds = array<i64: 1>, scalar_prefetch = 0 : i64, scratch_operands = 0 : i64, tpu.core_type = #tpu.core_type<tc>, window_params = [{transform_indices = @transform_0, window_bounds = array<i64: 8, 100>}, {transform_indices = @transform_1, window_bounds = array<i64: 8, 50>}, {pipeline_mode = #tpu.pipeline_mode<synchronous>, transform_indices = @transform_2, window_bounds = array<i64: 100, 50>}, {pipeline_mode = #tpu.pipeline_mode<synchronous>, transform_indices = @transform_3, window_bounds = array<i64: 1, 50>}, {pipeline_mode = #tpu.pipeline_mode<synchronous>, transform_indices = @transform_4, window_bounds = array<i64: 50, 10>}, {pipeline_mode = #tpu.pipeline_mode<synchronous>, transform_indices = @transform_5, window_bounds = array<i64: 1, 10>}, {transform_indices = @transform_6, window_bounds = array<i64: 8, 10>}]} {
    %c0 = arith.constant 0 : index
    %c0_0 = arith.constant 0 : index
    %0 = vector.load %arg1[%c0, %c0_0] : memref<8x100xf32, #tpu.memory_space<vmem>>, vector<8x100xf32>
    %c0_1 = arith.constant 0 : index
    %c0_2 = arith.constant 0 : index
    %1 = vector.load %arg3[%c0_1, %c0_2] : memref<100x50xf32, #tpu.memory_space<vmem>>, vector<100x50xf32>
    %cst = arith.constant dense<0.000000e+00> : vector<8x50xf32>
    %2 = tpu.matmul %0, %1, %cst {dimension_numbers = #tpu.dot_dimension_numbers<[1], [0], [0], [1], [0, 0, 1, 1], [], []>} : vector<8x100xf32>, vector<100x50xf32>, vector<8x50xf32> -> vector<8x50xf32>
    %c0_3 = arith.constant 0 : index
    %c0_4 = arith.constant 0 : index
    %3 = vector.load %arg4[%c0_3, %c0_4] : memref<1x50xf32, #tpu.memory_space<vmem>>, vector<1x50xf32>
    %4 = vector.broadcast %3 : vector<1x50xf32> to vector<8x50xf32>
    %5 = arith.addf %2, %4 : vector<8x50xf32>
    %cst_5 = arith.constant 0.000000e+00 : f32
    %6 = vector.broadcast %cst_5 : f32 to vector<8x50xf32>
    %7 = arith.maximumf %5, %6 : vector<8x50xf32>
    %c0_6 = arith.constant 0 : index
    %c0_7 = arith.constant 0 : index
    %8 = vector.load %arg2[%c0_6, %c0_7] : memref<8x50xi32, #tpu.memory_space<vmem>>, vector<8x50xi32>
    %c-2147483648_i32 = arith.constant -2147483648 : i32
    %9 = vector.broadcast %c-2147483648_i32 : i32 to vector<8x50xi32>
    %10 = arith.cmpi uge, %8, %9 : vector<8x50xi32>
    %cst_8 = arith.constant 0.000000e+00 : f32
    %11 = vector.broadcast %cst_8 : f32 to vector<8x50xf32>
    %12 = arith.select %10, %7, %11 : vector<8x50xi1>, vector<8x50xf32>
    %c0_9 = arith.constant 0 : index
    %c0_10 = arith.constant 0 : index
    %13 = vector.load %arg5[%c0_9, %c0_10] : memref<50x10xf32, #tpu.memory_space<vmem>>, vector<50x10xf32>
    %cst_11 = arith.constant dense<0.000000e+00> : vector<8x10xf32>
    %14 = tpu.matmul %12, %13, %cst_11 {dimension_numbers = #tpu.dot_dimension_numbers<[1], [0], [0], [1], [0, 0, 1, 1], [], []>} : vector<8x50xf32>, vector<50x10xf32>, vector<8x10xf32> -> vector<8x10xf32>
    %c0_12 = arith.constant 0 : index
    %c0_13 = arith.constant 0 : index
    %15 = vector.load %arg6[%c0_12, %c0_13] : memref<1x10xf32, #tpu.memory_space<vmem>>, vector<1x10xf32>
    %16 = vector.broadcast %15 : vector<1x10xf32> to vector<8x10xf32>
    %17 = arith.addf %14, %16 : vector<8x10xf32>
    %c0_14 = arith.constant 0 : index
    %c0_15 = arith.constant 0 : index
    %18 = vector.load %arg7[%c0_14, %c0_15] : memref<8x10xf32, #tpu.memory_space<vmem>>, vector<8x10xf32>
    tpu.vector_store %arg7[%c0_14, %c0_15], %17 {strides = array<i32>} : memref<8x10xf32, #tpu.memory_space<vmem>>, vector<8x10xf32>,
    return
  }
  func.func @transform_0(%arg0: i32) -> (i32, i32) {
    %c0_i32 = arith.constant 0 : i32
    %c0_i32_0 = arith.constant 0 : i32
    return %arg0, %c0_i32 : i32, i32
  }
  func.func @transform_1(%arg0: i32) -> (i32, i32) {
    %c0_i32 = arith.constant 0 : i32
    %c0_i32_0 = arith.constant 0 : i32
    return %arg0, %c0_i32 : i32, i32
  }
  func.func @transform_2(%arg0: i32) -> (i32, i32) {
    %c0_i32 = arith.constant 0 : i32
    %c0_i32_0 = arith.constant 0 : i32
    %c0_i32_1 = arith.constant 0 : i32
    return %c0_i32, %c0_i32_0 : i32, i32
  }
  func.func @transform_3(%arg0: i32) -> (i32, i32) {
    %c0_i32 = arith.constant 0 : i32
    %c0_i32_0 = arith.constant 0 : i32
    %c0_i32_1 = arith.constant 0 : i32
    return %c0_i32, %c0_i32_0 : i32, i32
  }
  func.func @transform_4(%arg0: i32) -> (i32, i32) {
    %c0_i32 = arith.constant 0 : i32
    %c0_i32_0 = arith.constant 0 : i32
    %c0_i32_1 = arith.constant 0 : i32
    return %c0_i32, %c0_i32_0 : i32, i32
  }
  func.func @transform_5(%arg0: i32) -> (i32, i32) {
    %c0_i32 = arith.constant 0 : i32
    %c0_i32_0 = arith.constant 0 : i32
    %c0_i32_1 = arith.constant 0 : i32
    return %c0_i32, %c0_i32_0 : i32, i32
  }
  func.func @transform_6(%arg0: i32) -> (i32, i32) {
    %c0_i32 = arith.constant 0 : i32
    %c0_i32_0 = arith.constant 0 : i32
    return %arg0, %c0_i32 : i32, i32
  }
}

</mosaic_0001>

<bundles_post_ra>
// kernel: tpu_custom_call.1
= control target key start
LH: loop header
LB: loop body
LE: loop exit
PB: predicated region body
PF: predicated region fallthrough
CT: control target
= control target key end

     0   :  { %vm49_vm0 = vcmask 1043456   ;;  %v334_v1 = vmov 0.0   ;;  %vm335_vm1 = vmmov 0   ;;  %vm145_vm2 = vcmask 1041408   ;;  %s469_s0 = inlined_call_operand.vmem [shape: f32[8,100], index: 0, kind: input, shape index: {}]   ;;  %s470_s1 = inlined_call_operand.vmem [shape: u32[8,50], index: 1, kind: input, shape index: {}]   ;;  %s471_s2 = inlined_call_operand.vmem [shape: f32[100,50], index: 2, kind: input, shape index: {}]   ;;  %s472_s3 = inlined_call_operand.vmem [shape: f32[1,50], index: 3, kind: input, shape index: {}]   ;;  %s473_s4 = inlined_call_operand.vmem [shape: f32[50,10], index: 4, kind: input, shape index: {}]   ;;  %s474_s5 = inlined_call_operand.vmem [shape: f32[1,10], index: 5, kind: input, shape index: {}]   ;;  %s475_s6 = inlined_call_operand.hbm [shape: f32[8,10], index: 6, kind: output, shape index: {}]  }
   0x1   :  { %v37_v0 = vld [vmem:[%s471_s2 + $0x60] sm:$0xf]  ;;  %263 = vmatprep.subr.mxu0 %v334_v1  ;;  %v36_v2 = vld [vmem:[%s471_s2 + $0x58] sm:$0xff]  ;;  %292 = vmatprep.subr.mxu1 %v334_v1  ;;  %v35_v3 = vld [vmem:[%s471_s2 + $0x50] sm:$0xff] }
   0x2   :  { %264 = vmatpush3.msk.msra.mxu0 %vm49_vm0, %v37_v0  ;;  %289 = vmatprep.mubr.msk.f32.mxu0 %vm335_vm1, %v334_v1  ;;  %v133_v4 = vld [vmem:[%s473_s4 + $0x30] sm:$0x3]  ;;  %v34_v5 = vld [vmem:[%s471_s2 + $0x48] sm:$0xff]  ;;  %v131_v7 = vld [vmem:[%s473_s4 + $0x20] sm:$0xff] }
   0x3   :  { %265 = vmatprep.subr.mxu0 %v334_v1  ;;  %306 = vmatprep.mubr.msk.f32.mxu1 %vm335_vm1, %v334_v1  ;;  %v132_v6 = vld [vmem:[%s473_s4 + $0x28] sm:$0xff] }
   0x4   :  { %266 = vmatpush3.msra.mxu0 %v36_v2  ;;  %293 = vmatpush3.msk.msra.mxu1 %vm145_vm2, %v133_v4 }
   0x5   :  { %267 = vmatprep.subr.mxu0 %v334_v1  ;;  %294 = vmatprep.subr.mxu1 %v334_v1 }
   0x6   :  { %268 = vmatpush3.msra.mxu0 %v35_v3 }
   0x7   :  { %11 = vsyncpa [#allocation3], 0  ;;  %269 = vmatprep.subr.mxu0 %v334_v1  ;;  %v33_v8 = vld [vmem:[%s471_s2 + $0x40] sm:$0xff]  ;;  %295 = vmatpush3.msra.mxu1 %v132_v6  ;;  %v130_v9 = vld [vmem:[%s473_s4 + $0x18] sm:$0xff]  ;;  %vm45_vm3 = vcmask 818176   ;;  %vm141_vm5 = vcmask 408576  }
   0x8   :  { %270 = vmatpush3.msra.mxu0 %v34_v5  ;;  %296 = vmatprep.subr.mxu1 %v334_v1  ;;  %v32_v10 = vld [vmem:[%s471_s2 + $0x38] sm:$0xff]  ;;  %v31_v11 = vld [vmem:[%s471_s2 + $0x30] sm:$0xff]  ;;  %v30_v12 = vld [vmem:[%s471_s2 + $0x28] sm:$0xff]  ;;  %vm219_vm6 = vcmask 80896  }
   0x9   :  { %271 = vmatprep.subr.mxu0 %v334_v1  ;;  %297 = vmatpush3.msra.mxu1 %v131_v7  ;;  %v29_v13 = vld [vmem:[%s471_s2 + $0x20] sm:$0xff]  ;;  %v28_v14 = vld [vmem:[%s471_s2 + $0x18] sm:$0xff]  ;;  %v27_v15 = vld [vmem:[%s471_s2 + $0x10] sm:$0xff] }
   0xa   :  { %272 = vmatpush3.msra.mxu0 %v33_v8  ;;  %298 = vmatprep.subr.mxu1 %v334_v1  ;;  %v26_v16 = vld [vmem:[%s471_s2 + $0x8] sm:$0xff]  ;;  %v25_v17 = vld [vmem:[%s471_s2] sm:$0xff]  ;;  %v129_v19 = vld [vmem:[%s473_s4 + $0x10] sm:$0xff] }
   0xb   :  { %273 = vmatprep.subr.mxu0 %v334_v1  ;;  %299 = vmatpush3.msra.mxu1 %v130_v9  ;;  %v24_v18 = vld [vmem:[%s469_s0] sm:$0xff]  ;;  %v128_v20 = vld [vmem:[%s473_s4 + $0x8] sm:$0xff] }
   0xc   :  { %274 = vmatpush3.msra.mxu0 %v32_v10  ;;  %300 = vmatprep.subr.mxu1 %v334_v1  ;;  %v127_v21 = vld [vmem:[%s473_s4] sm:$0xff]  ;;  %s336_s4 = smov [#allocation2]  }
   0xd   :  { %275 = vmatprep.subr.mxu0 %v334_v1  ;;  %301 = vmatpush3.msra.mxu1 %v129_v19  ;;  %v235_v22 = vld [vmem:[%s472_s3] ss:$0 sm:$0xff]  ;;  %s227_s19 = sshll.u32 %s336_s4, 4  ;;  %s228_s19 = int_to_ptr.vmem [resolvable:$true] %s227_s19 }
   0xe   :  { %276 = vmatpush3.msra.mxu0 %v31_v11  ;;  %302 = vmatprep.subr.mxu1 %v334_v1  ;;  %v124_v23 = vld [vmem:[%s470_s1] sm:$0xff]  ;;  %s312_s1 = scalar_lea.vmem %s228_s19, 128  ;;  %p317_p1 = scmp.lt.s32.totalorder %s228_s19, %s228_s19 }
   0xf   :  { %277 = vmatprep.subr.mxu0 %v334_v1  ;;  %303 = vmatpush3.msra.mxu1 %v128_v20  ;;  %vm125_vm4 = vcmp.ge.u32.totalorder %v124_v23, 2147483648  ;;  %v238_v29 = vld [vmem:[%s474_s5] ss:$0 sm:$0xff]  ;;  %p313_p0 = scmp.ne.s32.totalorder %s228_s19, %s312_s1  ;;  %p318_p2 = scmp.lt.s32.totalorder %s312_s1, %s312_s1 }
  0x10   :  { %278 = vmatpush3.msra.mxu0 %v30_v12  ;;  %304 = vmatprep.subr.mxu1 %v334_v1 }
  0x11   :  { %279 = vmatprep.subr.mxu0 %v334_v1  ;;  %305 = vmatpush3.msra.mxu1 %v127_v21  ;;  %p319_p3 = por %p318_p2, %p317_p1 }
  0x12   :  { %280 = vmatpush3.msra.mxu0 %v29_v13 }
  0x13   :  { %281 = vmatprep.subr.mxu0 %v334_v1  ;;  %p320_p4 = pnand %p319_p3, %p313_p0 }
  0x14   :  { %282 = vmatpush3.msra.mxu0 %v28_v14 }
  0x15   :  { %283 = vmatprep.subr.mxu0 %v334_v1 }
  0x16   :  { %284 = vmatpush3.msra.mxu0 %v27_v15 }
  0x17   :  { %285 = vmatprep.subr.mxu0 %v334_v1 }
  0x18   :  { %286 = vmatpush3.msra.mxu0 %v26_v16 }
  0x19   :  { %287 = vmatprep.subr.mxu0 %v334_v1 }
  0x1a   :  { %288 = vmatpush3.msra.mxu0 %v25_v17 }
  0x1b   :  { %290 = vmatmul.mubr.msk.f32.vlgmr.msra.gmra.mxu0 %vm45_vm3, %v24_v18 }
  0xdb   :  { %v119_v24 = vpop.f32.mrf.mxu0 }
  0xdc   :  { %v120_v25 = vadd.f32 %v235_v22, %v119_v24 }
  0xdd   :  { %v291_v26 = vpop.f32.mrf.mxu0 }
  0xde   :  { %v123_v27 = vmax.f32 %v120_v25, 0.0 }
  0xe0   :  { %v126_v28 = vsel %vm125_vm4, %v123_v27, 0.0 }
  0xe1   :  { %307 = vmatmul.mubr.msk.f32.vlgmr.msra.gmra.mxu1 %vm141_vm5, %v126_v28 }
 0x1a1   :  { %v215_v30 = vpop.f32.mrf.mxu1 }
 0x1a2   :  { %v216_v31 = vadd.f32 %v238_v29, %v215_v30 }
 0x1a3   :  { %v308_v32 = vpop.f32.mrf.mxu1 }
 0x1a4   :  { %220 = vst.msk [vmem:[#allocation2] sm:$0xff] %vm219_vm6, %v216_v31 }
 0x1a5   :  { %323 = shalt.err (!%p320_p4)
}
 0x1a6   :  { %230 = dma.vmem_to_hbm [thread:$0]  %s228_s19, 128, %s475_s6, [#allocation3]  }
 0x1a7   :  { %332 = dma.done.wait [#allocation3], 128  }
 0x1a8   :  { %333 = vsyncadd [#allocation3], 4294967168 }
 0x1a9   :  { %234 = vsyncpa [#allocation3], 1 }

</bundles_post_ra>
